<compile_context>
chip_gen: v5e
topology: v5e:2x2
jax: 0.10.0
libtpu: 0.0.40
codegen_flags: <defaults>
</compile_context>

<pallas_src>
import functools

import jax
import jax.numpy as jnp
from jax.experimental import pallas as pl
from jax.experimental.pallas import tpu as pltpu


def _patch_embed_kernel(p_ref, w_ref, b_ref, o_ref):
    # p_ref: (tm, K) bf16 patch tile; w_ref: (K, E_pad) bf16 weight;
    # b_ref: (1, E_pad) f32 bias; o_ref: (tm, E_pad) output tile.
    acc = jnp.dot(p_ref[...], w_ref[...], preferred_element_type=jnp.float32)
    o_ref[...] = (acc + b_ref[...]).astype(o_ref.dtype)


@functools.partial(
    jax.jit, static_argnames=("patch_size", "tile_m", "vmem_budget_bytes")
)
def patch_embedding(x, w_conv, b_conv, *, patch_size, tile_m=1024,
                    vmem_budget_bytes=24 * 1024 * 1024):
    """x: (B, C_in, H, W); w_conv: (E, C_in, P, P); b_conv: (E,).

    Returns (B, (H//P)*(W//P), E), matching Conv2d(stride=kernel=P) followed by
    rearrange 'b c h w -> b (h w) c'.
    """
    B, Cin, H, W = x.shape
    P = patch_size
    E = w_conv.shape[0]
    Hp, Wp = H // P, W // P
    N = Hp * Wp
    K = Cin * P * P
    M = B * N

    compute_dtype = jnp.bfloat16
    out_dtype = x.dtype

    # --- im2col (pure layout, fused by XLA under jit) -----------------------
    # Cast to bf16 FIRST so the materialized (B*N, K) intermediate is half the
    # bytes; patch elements flattened in (c, kh, kw) order to match Conv2d.
    xb = x.astype(compute_dtype)
    patches = (
        xb.reshape(B, Cin, Hp, P, Wp, P)
        .transpose(0, 2, 4, 1, 3, 5)
        .reshape(M, K)
    )

    # --- weight / bias prep: lane-dense E (pad to a multiple of 128) --------
    E_pad = ((E + 127) // 128) * 128
    w_t = w_conv.reshape(E, K).T.astype(compute_dtype)          # (K, E)
    b_2d = b_conv.reshape(1, E).astype(jnp.float32)             # (1, E)
    if E_pad != E:
        w_t = jnp.pad(w_t, ((0, 0), (0, E_pad - E)))
        b_2d = jnp.pad(b_2d, ((0, 0), (0, E_pad - E)))

    # --- M-tile sizing under an explicit VMEM budget -------------------------
    # Double-buffered patch tile + double-buffered output tile + (double-
    # buffered) weight + bias must fit well under the scoped VMEM limit on the
    # smallest target (v7x 64 MiB physical / v5e 16 MiB default scoped).
    in_bytes = jnp.dtype(compute_dtype).itemsize
    out_bytes = jnp.dtype(out_dtype).itemsize
    fixed_bytes = 2 * K * E_pad * in_bytes + 2 * E_pad * 4
    per_row_bytes = 2 * K * in_bytes + 2 * E_pad * out_bytes
    avail = max(vmem_budget_bytes - fixed_bytes, per_row_bytes * 256)
    tm_cap = max(256, (avail // per_row_bytes) // 256 * 256)
    tm = max(256, (min(tile_m, tm_cap) // 256) * 256)
    if M <= tm:
        tm = M  # single full-extent block (small / test configs)

    grid = (pl.cdiv(M, tm),)

    out = pl.pallas_call(
        _patch_embed_kernel,
        out_shape=jax.ShapeDtypeStruct((M, E_pad), out_dtype),
        grid_spec=pltpu.PrefetchScalarGridSpec(
            num_scalar_prefetch=0,
            grid=grid,
            in_specs=[
                pl.BlockSpec((tm, K), lambda m: (m, 0)),        # patch tile
                pl.BlockSpec((K, E_pad), lambda m: (0, 0)),     # weight (constant)
                pl.BlockSpec((1, E_pad), lambda m: (0, 0)),     # bias (constant)
            ],
            out_specs=pl.BlockSpec((tm, E_pad), lambda m: (m, 0)),
        ),
        compiler_params=pltpu.CompilerParams(
            dimension_semantics=("parallel",),
            vmem_limit_bytes=64 * 1024 * 1024,
            # Let XLA fuse the im2col transpose/cast into the patch operand
            # instead of materializing a separate HBM pass (weight/bias stay
            # materialized — they are tiny and reused every step).
            allow_input_fusion=[True, False, False],
        ),
    )(patches, w_t, b_2d)

    if E_pad != E:
        out = out[:, :E]
    return out.reshape(B, N, E)


def _reference(x, w_conv, b_conv, patch_size):
    # Ground truth: actual strided conv (equivalent to the PyTorch module).
    y = jax.lax.conv_general_dilated(
        x, w_conv,
        window_strides=(patch_size, patch_size),
        padding="VALID",
        dimension_numbers=("NCHW", "OIHW", "NCHW"),
    )
    y = y + b_conv.reshape(1, -1, 1, 1)
    B, E, Hp, Wp = y.shape
    return y.transpose(0, 2, 3, 1).reshape(B, Hp * Wp, E)  # 'b c h w -> b (h w) c'


if __name__ == "__main__":
    B, in_channels, img_size, patch_size, embed_dim = 2, 4, 16, 4, 32

    key = jax.random.PRNGKey(0)
    kx, kw, kb = jax.random.split(key, 3)

    x = jax.random.normal(kx, (B, in_channels, img_size, img_size), dtype=jnp.float32)
    w_conv = jax.random.normal(
        kw, (embed_dim, in_channels, patch_size, patch_size), dtype=jnp.float32
    ) * 0.1
    b_conv = jax.random.normal(kb, (embed_dim,), dtype=jnp.float32) * 0.1

    y = patch_embedding(x, w_conv, b_conv, patch_size=patch_size)
    y = jax.block_until_ready(y)

    y_ref = _reference(x, w_conv, b_conv, patch_size)
    num_patches = (img_size // patch_size) ** 2
    assert y.shape == (B, num_patches, embed_dim)
    # bf16 inputs with f32 accumulation -> loosened tolerance vs the f32 conv.
    assert jnp.allclose(y, y_ref, atol=2e-2, rtol=2e-2), "mismatch vs reference"

    print("KERNEL_OK")
</pallas_src>

<mosaic_0001>
module attributes {stable_mosaic.version = 11 : i64} {
  func.func @_patch_embed_kernel(%arg0: i32, %arg1: memref<32x64xbf16, #tpu.memory_space<vmem>>, %arg2: memref<64x128xbf16, #tpu.memory_space<vmem>>, %arg3: memref<1x128xf32, #tpu.memory_space<vmem>>, %arg4: memref<32x128xf32, #tpu.memory_space<vmem>>) attributes {dimension_semantics = [#tpu.dimension_semantics<parallel>], iteration_bounds = array<i64: 1>, scalar_prefetch = 0 : i64, scratch_operands = 0 : i64, tpu.core_type = #tpu.core_type<tc>, window_params = [{transform_indices = @transform_0, window_bounds = array<i64: 32, 64>}, {pipeline_mode = #tpu.pipeline_mode<synchronous>, transform_indices = @transform_1, window_bounds = array<i64: 64, 128>}, {pipeline_mode = #tpu.pipeline_mode<synchronous>, transform_indices = @transform_2, window_bounds = array<i64: 1, 128>}, {transform_indices = @transform_3, window_bounds = array<i64: 32, 128>}]} {
    %c0 = arith.constant 0 : index
    %c0_0 = arith.constant 0 : index
    %0 = vector.load %arg1[%c0, %c0_0] : memref<32x64xbf16, #tpu.memory_space<vmem>>, vector<32x64xbf16>
    %c0_1 = arith.constant 0 : index
    %c0_2 = arith.constant 0 : index
    %1 = vector.load %arg2[%c0_1, %c0_2] : memref<64x128xbf16, #tpu.memory_space<vmem>>, vector<64x128xbf16>
    %cst = arith.constant dense<0.000000e+00> : vector<32x128xf32>
    %2 = tpu.matmul %0, %1, %cst {dimension_numbers = #tpu.dot_dimension_numbers<[1], [0], [0], [1], [0, 0, 1, 1], [], []>} : vector<32x64xbf16>, vector<64x128xbf16>, vector<32x128xf32> -> vector<32x128xf32>
    %c0_3 = arith.constant 0 : index
    %c0_4 = arith.constant 0 : index
    %3 = vector.load %arg3[%c0_3, %c0_4] : memref<1x128xf32, #tpu.memory_space<vmem>>, vector<1x128xf32>
    %4 = vector.broadcast %3 : vector<1x128xf32> to vector<32x128xf32>
    %5 = arith.addf %2, %4 : vector<32x128xf32>
    %c0_5 = arith.constant 0 : index
    %c0_6 = arith.constant 0 : index
    %6 = vector.load %arg4[%c0_5, %c0_6] : memref<32x128xf32, #tpu.memory_space<vmem>>, vector<32x128xf32>
    tpu.vector_store %arg4[%c0_5, %c0_6], %5 {strides = array<i32>} : memref<32x128xf32, #tpu.memory_space<vmem>>, vector<32x128xf32>,
    return
  }
  func.func @transform_0(%arg0: i32) -> (i32, i32) {
    %c0_i32 = arith.constant 0 : i32
    %c0_i32_0 = arith.constant 0 : i32
    return %arg0, %c0_i32 : i32, i32
  }
  func.func @transform_1(%arg0: i32) -> (i32, i32) {
    %c0_i32 = arith.constant 0 : i32
    %c0_i32_0 = arith.constant 0 : i32
    %c0_i32_1 = arith.constant 0 : i32
    return %c0_i32, %c0_i32_0 : i32, i32
  }
  func.func @transform_2(%arg0: i32) -> (i32, i32) {
    %c0_i32 = arith.constant 0 : i32
    %c0_i32_0 = arith.constant 0 : i32
    %c0_i32_1 = arith.constant 0 : i32
    return %c0_i32, %c0_i32_0 : i32, i32
  }
  func.func @transform_3(%arg0: i32) -> (i32, i32) {
    %c0_i32 = arith.constant 0 : i32
    %c0_i32_0 = arith.constant 0 : i32
    return %arg0, %c0_i32 : i32, i32
  }
}

</mosaic_0001>

<bundles_post_ra>
// kernel: patch_embedding.1
= control target key start
LH: loop header
LB: loop body
LE: loop exit
PB: predicated region body
PF: predicated region fallthrough
CT: control target
= control target key end

     0   :  { %s227_s0 = inlined_call_operand.vmem [shape: bf16[32,64], index: 0, kind: input, shape index: {}]   ;;  %s228_s1 = inlined_call_operand.vmem [shape: bf16[64,128], index: 1, kind: input, shape index: {}]   ;;  %s229_s2 = inlined_call_operand.vmem [shape: f32[1,128], index: 2, kind: input, shape index: {}]   ;;  %s230_s3 = inlined_call_operand.hbm [shape: f32[32,128], index: 3, kind: output, shape index: {}]  }
   0x1   :  { %v145_v0 = vld [vmem:[%s228_s1 + $0x18] sm:$0xff]  ;;  %v144_v1 = vld [vmem:[%s228_s1 + $0x10] sm:$0xff] }
   0x2   :  { %77 = vmatpush.bf16.msra.mxu0 %v145_v0  ;;  %146 = vmatpush.bf16.msra.mxu1 %v145_v0 }
   0x3   :  { %8 = vsyncpa [#allocation3], 0  ;;  %v143_v2 = vld [vmem:[%s228_s1 + $0x8] sm:$0xff]  ;;  %v142_v3 = vld [vmem:[%s228_s1] sm:$0xff]  ;;  %vm66_vm0 = vcmask 523264   ;;  %s180_s1 = smov [#allocation2]  }
   0x4   :  { %v140_v4 = vld [vmem:[%s227_s0] sm:$0xff]  ;;  %v141_v5 = vld [vmem:[%s227_s0 + $0x8] sm:$0xff]  ;;  %s100_s26 = sshll.u32 %s180_s1, 4  ;;  %s102_s0 = sshll.u32 %s230_s3, 4  ;;  %s101_s26 = int_to_ptr.vmem [resolvable:$true] %s100_s26  ;;  %s103_s0 = int_to_ptr.hbm [resolvable:$true] %s102_s0 }
   0x5   :  { %v153_v6 = vld [vmem:[%s229_s2] ss:$0 sm:$0xff]  ;;  %s181_s2 = smov 128   ;;  %s182_s29 = smov 8  }
   0x6   :  { %78 = vmatpush.bf16.msra.mxu0 %v144_v1  ;;  %147 = vmatpush.bf16.msra.mxu1 %v144_v1 }
   0xa   :  { %79 = vmatpush.bf16.msra.mxu0 %v143_v2  ;;  %148 = vmatpush.bf16.msra.mxu1 %v143_v2 }
   0xe   :  { %80 = vmatpush.bf16.msra.mxu0 %v142_v3  ;;  %149 = vmatpush.bf16.msra.mxu1 %v142_v3 }
  0x11   :  { %138 = vmatmul.msk.bf16.vlgmr.msra.gmra.mxu0 %vm66_vm0, %v140_v4  ;;  %139 = vmatmul.msk.bf16.vlgmr.msra.gmra.mxu1 %vm66_vm0, %v141_v5 }
  0x8e   :  { %v82_v7 = vpop.f32.mrf.mxu0  ;;  %v87_v8 = vpop.f32.mrf.mxu1 }
  0x8f   :  { %v83_v9 = vadd.f32 %v153_v6, %v82_v7  ;;  %v88_v10 = vadd.f32 %v153_v6, %v87_v8 }
  0x91   :  { %92 = vst [vmem:[#allocation2] sm:$0xff] %v83_v9 }
  0x92   :  { %94 = vst [vmem:[#allocation2 + $0x10] sm:$0xff] %v88_v10 }
  0x96   :  { %v84_v11 = vpop.f32.mrf.mxu0  ;;  %v89_v12 = vpop.f32.mrf.mxu1 }
  0x97   :  { %v85_v13 = vadd.f32 %v153_v6, %v84_v11  ;;  %v90_v14 = vadd.f32 %v153_v6, %v89_v12 }
  0x99   :  { %93 = vst [vmem:[#allocation2 + $0x8] sm:$0xff] %v85_v13 }
  0x9a   :  { %95 = vst [vmem:[#allocation2 + $0x18] sm:$0xff] %v90_v14 }
  0x9b   :  { %108 = dma.vmem_to_hbm [thread:$0]  %s101_s26, 512, %s103_s0, [#allocation3], %s181_s2, %s181_s2, %s182_s29  }
  0x9c   :  { %178 = dma.done.wait [#allocation3], 512  }
  0x9d   :  { %179 = vsyncadd [#allocation3], 4294966784 }
  0x9e   :  { %113 = vsyncpa [#allocation3], 1 }

</bundles_post_ra>
